<compile_context>
chip_gen: v7x
topology: tpu7x:2x2x1
jax: 0.10.0
libtpu: 0.0.40
codegen_flags: <defaults>
</compile_context>

<pallas_src>
import functools

import jax
import jax.numpy as jnp
from jax.experimental import pallas as pl
from jax.experimental.pallas import tpu as pltpu

EPS = 1e-6


# ----------------------------- Pallas kernel ------------------------------- #

def _layernorm_kernel(x_ref, w_ref, b_ref, o_ref, *, eps):
    x = x_ref[...].astype(jnp.float32)            # (TM, d)
    d = x.shape[-1]

    # w / b: (1, d) blocks, DMA'd once (index_map pinned to block 0),
    # broadcast over the (TM, d) tile.
    w = w_ref[...].astype(jnp.float32)
    b = b_ref[...].astype(jnp.float32)

    mean = jnp.mean(x, axis=-1, keepdims=True)    # (TM, 1)
    xc = x - mean
    # torch.Tensor.std(-1): unbiased (divide by d-1); eps added to the std.
    var = jnp.sum(xc * xc, axis=-1, keepdims=True) * (1.0 / (d - 1))
    inv = 1.0 / (jnp.sqrt(var) + eps)             # (TM, 1) — negligible cost

    # y = x * scale + shift  with  scale = w*inv, shift = b - mean*scale.
    # Equivalent to w*(x-mean)*inv + b, but the centered temp `xc` is dead
    # after the variance reduction instead of staying live through the store.
    scale = w * inv                               # (1,d)*(TM,1) -> (TM, d)
    o_ref[...] = (x * scale + (b - mean * scale)).astype(o_ref.dtype)


# ------------------------------ tiling logic -------------------------------- #

def _sublane(itemsize):
    """Minimum legal sublane multiple for the given element size."""
    return {4: 8, 2: 16, 1: 32}.get(int(itemsize), 8)


def _choose_tiling(n, d, in_itemsize, out_itemsize):
    """Pick (block_rows, vmem_limit_bytes) per TPU generation.

    Working set per grid step ≈ 2×(in tile) + 2×(out tile) [double buffering]
    plus ~2 f32 (TM, d) intermediates the compiler materializes in VMEM.
    """
    try:
        vmem_phys = pltpu.get_tpu_info().vmem_capacity_bytes
    except Exception:  # interpret mode / unknown chip: assume 128 MiB parts
        vmem_phys = 128 << 20
    small_vmem = vmem_phys <= (64 << 20)          # v7x: 64 MiB per TC

    # ~4 MiB f32 per tile on v7x (keeps buffers+temps <= ~26 MiB of its
    # 32 MiB scoped / 64 MiB physical VMEM), ~8 MiB on v5e/v6e.
    tile_target = (4 << 20) if small_vmem else (8 << 20)
    budget_cap = (26 << 20) if small_vmem else (56 << 20)

    per_row = d * (2 * in_itemsize + 2 * out_itemsize + 2 * 4)
    sub = _sublane(in_itemsize)

    tm = min(tile_target // (d * 4), budget_cap // per_row)
    tm = int(max(1, tm))
    if tm >= n:
        tm = n                                    # single tile: block == full dims
    else:
        tm = max(sub, (tm // sub) * sub)          # dtype-aware sublane rounding

    working = tm * per_row + 4 * (d * 4) + (2 << 20)   # + w/b buffers + slack
    vmem_limit = int(min(max(working, 16 << 20), budget_cap + (6 << 20)))
    return tm, vmem_limit


# -------------------------------- wrapper ----------------------------------- #

def layer_norm_2d(x2d, w, b, *, eps=EPS, block_rows=None):
    n, d = x2d.shape
    assert d >= 2, "LayerNorm needs at least 2 features (unbiased std uses d-1)"

    in_isz = x2d.dtype.itemsize
    auto_rows, vmem_limit = _choose_tiling(n, d, in_isz, in_isz)
    if block_rows is None:
        block_rows = auto_rows
    else:
        sub = _sublane(in_isz)
        block_rows = min(int(block_rows), n)
        if block_rows != n:
            block_rows = max(sub, (block_rows // sub) * sub)

    w2d = w.reshape(1, d).astype(jnp.float32)
    b2d = b.reshape(1, d).astype(jnp.float32)

    cost = pl.CostEstimate(
        flops=int(8 * n * d),
        transcendentals=int(2 * n),
        bytes_accessed=int(2 * n * d * in_isz + 2 * d * 4),
    )

    return pl.pallas_call(
        functools.partial(_layernorm_kernel, eps=eps),
        grid=(pl.cdiv(n, block_rows),),
        in_specs=[
            pl.BlockSpec((block_rows, d), lambda i: (i, 0)),
            pl.BlockSpec((1, d), lambda i: (0, 0)),   # w: resident across grid
            pl.BlockSpec((1, d), lambda i: (0, 0)),   # b: resident across grid
        ],
        out_specs=pl.BlockSpec((block_rows, d), lambda i: (i, 0)),
        out_shape=jax.ShapeDtypeStruct((n, d), x2d.dtype),
        compiler_params=pltpu.CompilerParams(
            dimension_semantics=("parallel",),        # megacore sharding (v7x)
            vmem_limit_bytes=vmem_limit,
        ),
        cost_estimate=cost,
    )(x2d, w2d, b2d)


class LayerNorm:
    """JAX/Pallas port of the PyTorch LayerNorm module (utils.py semantics)."""

    def __init__(self, size, eps=EPS):
        self.size = size
        self.eps = eps
        self.w = jnp.ones((size,), jnp.float32)   # torch.ones(size)
        self.b = jnp.zeros((size,), jnp.float32)  # torch.zeros(size)

    def __call__(self, x, *, block_rows=None):
        shp = x.shape
        x2d = x.reshape(-1, shp[-1])
        y2d = layer_norm_2d(x2d, self.w, self.b, eps=self.eps,
                            block_rows=block_rows)
        return y2d.reshape(shp)


# ------------------------------ reference ----------------------------------- #

def _layernorm_ref(x, w, b, eps=EPS):
    x = x.astype(jnp.float32)
    mean = jnp.mean(x, axis=-1, keepdims=True)
    std = jnp.std(x, axis=-1, keepdims=True, ddof=1)   # unbiased, like torch
    return w * (x - mean) / (std + eps) + b


# --------------------------------- demo ------------------------------------- #

if __name__ == "__main__":
    key = jax.random.PRNGKey(0)
    k1, k2, k3, k4, k5 = jax.random.split(key, 5)

    # d_model a multiple of 128 -> lane-dense, unmasked stores.
    d_model = 128
    ln = LayerNorm(d_model, eps=EPS)

    # 1) Small eval: (batch=2, seq=8, d_model=128), default (ones/zeros) params.
    x = jax.random.normal(k1, (2, 8, d_model), dtype=jnp.float32)
    out = jax.block_until_ready(ln(x))
    ref = _layernorm_ref(x, ln.w, ln.b, EPS)
    assert out.shape == x.shape
    assert jnp.allclose(out, ref, atol=1e-3, rtol=1e-3), "mismatch (small)"

    # 2) Multi-step row grid incl. a partial last tile (N=200 rows, 64-row
    #    tiles -> 4 grid steps), non-trivial affine params.
    ln.w = 1.0 + 0.1 * jax.random.normal(k2, (d_model,), dtype=jnp.float32)
    ln.b = 0.1 * jax.random.normal(k3, (d_model,), dtype=jnp.float32)
    x2 = jax.random.normal(k4, (2, 100, d_model), dtype=jnp.float32)
    out2 = jax.block_until_ready(ln(x2, block_rows=64))
    ref2 = _layernorm_ref(x2, ln.w, ln.b, EPS)
    assert jnp.allclose(out2, ref2, atol=1e-3, rtol=1e-3), "mismatch (tiled)"

    # 3) bf16 I/O path (dtype-aware sublane rounding: 32 -> multiple of 16),
    #    f32 math inside the kernel, bf16 back to HBM.
    x3 = jax.random.normal(k5, (2, 48, d_model), dtype=jnp.float32)
    out3 = jax.block_until_ready(ln(x3.astype(jnp.bfloat16), block_rows=32))
    ref3 = _layernorm_ref(x3.astype(jnp.bfloat16), ln.w, ln.b, EPS)
    assert out3.dtype == jnp.bfloat16
    assert jnp.allclose(out3.astype(jnp.float32), ref3, atol=5e-2, rtol=5e-2), \
        "mismatch (bf16)"

    print("KERNEL_OK")
</pallas_src>

<mosaic_0001>
module attributes {stable_mosaic.version = 11 : i64} {
  func.func @_layernorm_kernel(%arg0: i32, %arg1: memref<16x128xf32, #tpu.memory_space<vmem>>, %arg2: memref<1x128xf32, #tpu.memory_space<vmem>>, %arg3: memref<1x128xf32, #tpu.memory_space<vmem>>, %arg4: memref<16x128xf32, #tpu.memory_space<vmem>>) attributes {dimension_semantics = [#tpu.dimension_semantics<parallel>], iteration_bounds = array<i64: 1>, scalar_prefetch = 0 : i64, scratch_operands = 0 : i64, tpu.core_type = #tpu.core_type<tc>, window_params = [{transform_indices = @transform_0, window_bounds = array<i64: 16, 128>}, {pipeline_mode = #tpu.pipeline_mode<synchronous>, transform_indices = @transform_1, window_bounds = array<i64: 1, 128>}, {pipeline_mode = #tpu.pipeline_mode<synchronous>, transform_indices = @transform_2, window_bounds = array<i64: 1, 128>}, {transform_indices = @transform_3, window_bounds = array<i64: 16, 128>}]} {
    %c0 = arith.constant 0 : index
    %c0_0 = arith.constant 0 : index
    %0 = vector.load %arg1[%c0, %c0_0] : memref<16x128xf32, #tpu.memory_space<vmem>>, vector<16x128xf32>
    %c0_1 = arith.constant 0 : index
    %c0_2 = arith.constant 0 : index
    %1 = vector.load %arg2[%c0_1, %c0_2] : memref<1x128xf32, #tpu.memory_space<vmem>>, vector<1x128xf32>
    %c0_3 = arith.constant 0 : index
    %c0_4 = arith.constant 0 : index
    %2 = vector.load %arg3[%c0_3, %c0_4] : memref<1x128xf32, #tpu.memory_space<vmem>>, vector<1x128xf32>
    %cst = arith.constant dense<0.000000e+00> : vector<16xf32>
    %3 = vector.multi_reduction <add>, %0, %cst [1] : vector<16x128xf32> to vector<16xf32>
    %4 = vector.shape_cast %3 : vector<16xf32> to vector<16x1xf32>
    %cst_5 = arith.constant 1.280000e+02 : f32
    %5 = vector.broadcast %cst_5 : f32 to vector<16x1xf32>
    %6 = arith.divf %4, %5 : vector<16x1xf32>
    %7 = vector.broadcast %6 : vector<16x1xf32> to vector<16x128xf32>
    %8 = arith.subf %0, %7 : vector<16x128xf32>
    %9 = arith.mulf %8, %8 : vector<16x128xf32>
    %cst_6 = arith.constant dense<0.000000e+00> : vector<16xf32>
    %10 = vector.multi_reduction <add>, %9, %cst_6 [1] : vector<16x128xf32> to vector<16xf32>
    %11 = vector.shape_cast %10 : vector<16xf32> to vector<16x1xf32>
    %cst_7 = arith.constant 0.00787401571 : f32
    %12 = vector.broadcast %cst_7 : f32 to vector<16x1xf32>
    %13 = arith.mulf %11, %12 : vector<16x1xf32>
    %14 = math.sqrt %13 : vector<16x1xf32>
    %cst_8 = arith.constant 9.99999997E-7 : f32
    %15 = vector.broadcast %cst_8 : f32 to vector<16x1xf32>
    %16 = arith.addf %14, %15 : vector<16x1xf32>
    %cst_9 = arith.constant 1.000000e+00 : f32
    %17 = vector.broadcast %cst_9 : f32 to vector<16x1xf32>
    %18 = arith.divf %17, %16 : vector<16x1xf32>
    %19 = vector.broadcast %1 : vector<1x128xf32> to vector<16x128xf32>
    %20 = vector.broadcast %18 : vector<16x1xf32> to vector<16x128xf32>
    %21 = arith.mulf %19, %20 : vector<16x128xf32>
    %22 = arith.mulf %0, %21 : vector<16x128xf32>
    %23 = vector.broadcast %6 : vector<16x1xf32> to vector<16x128xf32>
    %24 = arith.mulf %23, %21 : vector<16x128xf32>
    %25 = vector.broadcast %2 : vector<1x128xf32> to vector<16x128xf32>
    %26 = arith.subf %25, %24 : vector<16x128xf32>
    %27 = arith.addf %22, %26 : vector<16x128xf32>
    %c0_10 = arith.constant 0 : index
    %c0_11 = arith.constant 0 : index
    %28 = vector.load %arg4[%c0_10, %c0_11] : memref<16x128xf32, #tpu.memory_space<vmem>>, vector<16x128xf32>
    tpu.vector_store %arg4[%c0_10, %c0_11], %27 {strides = array<i32>} : memref<16x128xf32, #tpu.memory_space<vmem>>, vector<16x128xf32>,
    return
  }
  func.func @transform_0(%arg0: i32) -> (i32, i32) {
    %c0_i32 = arith.constant 0 : i32
    %c0_i32_0 = arith.constant 0 : i32
    return %arg0, %c0_i32 : i32, i32
  }
  func.func @transform_1(%arg0: i32) -> (i32, i32) {
    %c0_i32 = arith.constant 0 : i32
    %c0_i32_0 = arith.constant 0 : i32
    %c0_i32_1 = arith.constant 0 : i32
    return %c0_i32, %c0_i32_0 : i32, i32
  }
  func.func @transform_2(%arg0: i32) -> (i32, i32) {
    %c0_i32 = arith.constant 0 : i32
    %c0_i32_0 = arith.constant 0 : i32
    %c0_i32_1 = arith.constant 0 : i32
    return %c0_i32, %c0_i32_0 : i32, i32
  }
  func.func @transform_3(%arg0: i32) -> (i32, i32) {
    %c0_i32 = arith.constant 0 : i32
    %c0_i32_0 = arith.constant 0 : i32
    return %arg0, %c0_i32 : i32, i32
  }
}

</mosaic_0001>

<bundles_post_ra>
// kernel: tpu_custom_call.1
= control target key start
LH: loop header
LB: loop body
LE: loop exit
PB: predicated region body
PF: predicated region fallthrough
CT: control target
= control target key end

     0   :  { %8 = vsyncpa [#allocation3], 0  ;;  %s233_s0 = inlined_call_operand.hbm [shape: f32[16,128], index: 0, kind: input, shape index: {}]   ;;  %s234_s1 = inlined_call_operand.vmem [shape: f32[1,128], index: 1, kind: input, shape index: {}]   ;;  %s235_s2 = inlined_call_operand.vmem [shape: f32[1,128], index: 2, kind: input, shape index: {}]   ;;  %s236_s3 = inlined_call_operand.hbm [shape: f32[16,128], index: 3, kind: output, shape index: {}]  }
   0x1   :  { %9 = vsyncpa [#allocation4], 0  ;;  %s173_s12 = smov [#allocation2]   ;;  %s125_s16 = scalar_lea.hbm %s233_s0, 256 }
   0x2   :  { %s15_s13 = sshll.u32 %s173_s12, 4  ;;  %p126_p0 = scmp.ne.s32.totalorder %s233_s0, %s125_s16  ;;  %s16_s13 = int_to_ptr.vmem [resolvable:$true] %s15_s13 }
   0x3   :  { %p129_p1 = scmp.lt.u32.totalorder %s125_s16, %s233_s0 }
   0x5   :  { %p131_p2 = pnand %p129_p1, %p126_p0 }
   0x7   :  { %134 = shalt.err (!%p131_p2)
}
   0x8   :  { %s135_s21 = scalar_lea.vmem %s16_s13, 256  ;;  %p140_p4 = scmp.lt.s32.totalorder %s16_s13, %s16_s13 }
   0x9   :  { %p136_p3 = scmp.ne.s32.totalorder %s16_s13, %s135_s21  ;;  %p141_p5 = scmp.lt.s32.totalorder %s135_s21, %s135_s21 }
   0xb   :  { %p142_p6 = por %p141_p5, %p140_p4 }
   0xd   :  { %p143_p7 = pnand %p142_p6, %p136_p3 }
   0xf   :  { %146 = shalt.err (!%p143_p7)
}
  0x10   :  { %s174_s22 = smov 128   ;;  %s175_s23 = smov 8  }
  0x11   :  { %21 = dma.hbm_to_vmem [thread:$0]  %s233_s0, 256, %s16_s13, [#allocation3], %s174_s22, %s174_s22, %s175_s23  }
  0x12   :  { %169 = dma.done.wait [#allocation3], 256  }
  0x13   :  { %170 = vsyncadd [#allocation3], 4294967040  ;;  %v29_v0 = vld [vmem:[#allocation2] sm:$0xff]  ;;  %v30_v1 = vld [vmem:[#allocation2 + $0x8] sm:$0xff]  ;;  %s176_s29 = smov [#allocation5]  }
  0x14   :  { %33 = vadd.xlane.f32.xlu0 %v29_v0  ;;  %v111_v26 = vld [vmem:[%s234_s1] ss:$0 sm:$0xff]  ;;  %s99_s30 = sshll.u32 %s176_s29, 4  ;;  %s100_s30 = int_to_ptr.vmem [resolvable:$true] %s99_s30 }
  0x15   :  { %v112_v29 = vld [vmem:[%s235_s2] ss:$0 sm:$0xff]  ;;  %s147_s1 = scalar_lea.vmem %s100_s30, 256  ;;  %p152_p9 = scmp.lt.s32.totalorder %s100_s30, %s100_s30 }
  0x16   :  { %p148_p8 = scmp.ne.s32.totalorder %s100_s30, %s147_s1  ;;  %p153_p10 = scmp.lt.s32.totalorder %s147_s1, %s147_s1 }
  0x18   :  { %35 = vadd.xlane.f32.xlu0 %v30_v1  ;;  %p154_p11 = por %p153_p10, %p152_p9 }
  0x1a   :  { %p155_p12 = pnand %p154_p11, %p148_p8 }
  0xa1   :  { %v34_v2 = vpop.xlane.xlu0 %33 }
  0xa2   :  { %v38_v3 = vmul.f32 0.0078125, %v34_v2 }
  0xa4   :  { %v40_v4 = vsub.f32 %v29_v0, %v38_v3 }
  0xa5   :  { %v36_v5 = vpop.xlane.xlu0 %35 }
  0xa6   :  { %v39_v6 = vmul.f32 0.0078125, %v36_v5  ;;  %v42_v7 = vmul.f32 %v40_v4, %v40_v4 }
  0xa8   :  { %v41_v8 = vsub.f32 %v30_v1, %v39_v6  ;;  %44 = vadd.xlane.f32.xlu1 %v42_v7 }
  0xaa   :  { %v43_v9 = vmul.f32 %v41_v8, %v41_v8 }
  0xac   :  { %46 = vadd.xlane.f32.xlu1 %v43_v9 }
 0x135   :  { %v45_v10 = vpop.xlane.xlu1 %44 }
 0x136   :  { %v48_v11 = vmul.f32 0.007874016, %v45_v10 }
 0x138   :  { %117 = vrsqrt.f32 %v48_v11  ;;  %vm52_vm0 = vcmp.eq.f32.partialorder %v48_v11, inf  ;;  %v55_v16 = vand.u32 2147483648, %v48_v11  ;;  %vm54_vm1 = vcmp.eq.f32.partialorder %v48_v11, 0.0 }
 0x139   :  { %v47_v12 = vpop.xlane.xlu1 %46 }
 0x13a   :  { %v49_v13 = vmul.f32 0.007874016, %v47_v12 }
 0x13c   :  { %119 = vrsqrt.f32 %v49_v13  ;;  %vm59_vm2 = vcmp.eq.f32.partialorder %v49_v13, inf  ;;  %v62_v22 = vand.u32 2147483648, %v49_v13  ;;  %vm61_vm3 = vcmp.eq.f32.partialorder %v49_v13, 0.0 }
 0x142   :  { %v118_v14 = vpop.eup %117 }
 0x143   :  { %v51_v15 = vmul.f32 %v118_v14, %v48_v11 }
 0x145   :  { %v53_v17 = vsel %vm52_vm0, %v48_v11, %v51_v15 }
 0x146   :  { %v120_v18 = vpop.eup %119  ;;  %v56_v19 = vsel %vm54_vm1, %v55_v16, %v53_v17 }
 0x147   :  { %v58_v20 = vmul.f32 %v120_v18, %v49_v13  ;;  %v64_v21 = vadd.f32 1e-06, %v56_v19 }
 0x149   :  { %v60_v23 = vsel %vm59_vm2, %v49_v13, %v58_v20  ;;  %121 = vrcp.f32 %v64_v21 }
 0x14a   :  { %v63_v24 = vsel %vm61_vm3, %v62_v22, %v60_v23 }
 0x14b   :  { %v65_v25 = vadd.f32 1e-06, %v63_v24 }
 0x14d   :  { %123 = vrcp.f32 %v65_v25 }
 0x153   :  { %v122_v27 = vpop.eup %121 }
 0x154   :  { %v76_v28 = vmul.f32 %v122_v27, %v111_v26 }
 0x156   :  { %v80_v30 = vmul.f32 %v76_v28, %v38_v3  ;;  %v78_v33 = vmul.f32 %v76_v28, %v29_v0 }
 0x157   :  { %v124_v31 = vpop.eup %123 }
 0x158   :  { %v77_v32 = vmul.f32 %v124_v31, %v111_v26  ;;  %v88_v34 = vsub.f32 %v112_v29, %v80_v30 }
 0x15a   :  { %v81_v35 = vmul.f32 %v77_v32, %v39_v6  ;;  %v90_v36 = vadd.f32 %v88_v34, %v78_v33  ;;  %v79_v37 = vmul.f32 %v77_v32, %v30_v1 }
 0x15c   :  { %v89_v38 = vsub.f32 %v112_v29, %v81_v35  ;;  %92 = vst [vmem:[#allocation5] sm:$0xff] %v90_v36 }
 0x15e   :  { %v91_v39 = vadd.f32 %v89_v38, %v79_v37 }
 0x160   :  { %93 = vst [vmem:[#allocation5 + $0x8] sm:$0xff] %v91_v39 }
 0x161   :  { %158 = shalt.err (!%p155_p12)
}
 0x162   :  { %s159_s5 = scalar_lea.hbm %s236_s3, 256 }
 0x163   :  { %p160_p13 = scmp.ne.s32.totalorder %s236_s3, %s159_s5  ;;  %p163_p0 = scmp.lt.u32.totalorder %s159_s5, %s236_s3 }
 0x165   :  { %p165_p1 = pnand %p163_p0, %p160_p13 }
 0x167   :  { %168 = shalt.err (!%p165_p1)
}
 0x168   :  { %105 = dma.vmem_to_hbm [thread:$0]  %s100_s30, 256, %s236_s3, [#allocation4], %s174_s22, %s174_s22, %s175_s23  }
 0x169   :  { %171 = dma.done.wait [#allocation4], 256  }
 0x16a   :  { %172 = vsyncadd [#allocation4], 4294967040 }
 0x16b   :  { %109 = vsyncpa [#allocation3], 1 }
 0x16c   :  { %110 = vsyncpa [#allocation4], 1 }

</bundles_post_ra>
